<compile_context>
chip_gen: v7x
topology: tpu7x:2x2x1
jax: 0.10.0
libtpu: 0.0.40
codegen_flags: <defaults>
</compile_context>

<pallas_src>
import jax
import jax.numpy as jnp
from jax.experimental import pallas as pl
from jax.experimental.pallas import tpu as pltpu


_LANES = 128
_TARGET_BLOCK_BYTES = 4 * 1024 * 1024   # ~4 MiB per block (per buffer)
_SMALL_BYTES = 1 * 1024 * 1024          # below this, a single block is fine
_VMEM_LIMIT_BYTES = 48 << 20            # 16 MiB needed + headroom; < v7x 64 MiB

# sin(t) on [0, pi/2]: odd degree-11 polynomial in t (Horner in t^2).
_S3 = -1.0 / 6.0
_S5 = 1.0 / 120.0
_S7 = -1.0 / 5040.0
_S9 = 1.0 / 362880.0
_S11 = -1.0 / 39916800.0


def _sinsig_kernel(x_ref, o_ref):
    # Load native dtype (halves HBM traffic for bf16), compute in f32.
    x = x_ref[...].astype(jnp.float32)
    # sigmoid(x) = 0.5*tanh(x/2) + 0.5  =>  t = (pi/2)*sigmoid(x) in (0, pi/2).
    t = (jnp.pi / 4.0) * jnp.tanh(0.5 * x) + (jnp.pi / 4.0)
    t2 = t * t
    # sin(t) via bounded-range polynomial (no range reduction needed).
    p = _S11
    p = p * t2 + _S9
    p = p * t2 + _S7
    p = p * t2 + _S5
    p = p * t2 + _S3
    sin_t = t * (p * t2 + 1.0)
    o_ref[...] = (x * sin_t).astype(o_ref.dtype)


def _sinsig_jnp(x):
    """Exact formula in f32; used for the <128-element tail of ragged inputs."""
    xf = x.astype(jnp.float32)
    return (xf * jnp.sin((jnp.pi / 2.0) * jax.nn.sigmoid(xf))).astype(x.dtype)


def _row_align(itemsize: int) -> int:
    # Sublane packing: 8 rows (4-byte), 16 (2-byte), 32 (1-byte dtypes).
    return max(8, 32 // max(itemsize, 1))


def _choose_tile_rows(rows: int, itemsize: int) -> int:
    total_bytes = rows * _LANES * itemsize
    align = _row_align(itemsize)
    if total_bytes <= _SMALL_BYTES or rows <= align:
        return rows  # single full-array block (legal: equals full dim)
    # Byte-budgeted tile, at least 2 (even) grid steps for megacore + overlap.
    max_tile_r = max(align, _TARGET_BLOCK_BYTES // (_LANES * itemsize))
    n_tiles = max(2, pl.cdiv(rows, max_tile_r))
    if n_tiles % 2:
        n_tiles += 1
    tile_r = pl.cdiv(rows, n_tiles)
    tile_r = ((tile_r + align - 1) // align) * align
    return tile_r


def sinsig(x: jax.Array) -> jax.Array:
    """SinSig forward: x * sin(pi/2 * sigmoid(x)) for any shape / TPU float dtype."""
    orig_shape = x.shape
    orig_dtype = x.dtype
    n = x.size
    if n == 0:
        return x

    itemsize = jnp.dtype(orig_dtype).itemsize
    flat = x.reshape(-1)
    rem = n % _LANES
    n_bulk = n - rem

    if n_bulk == 0:
        # Entire input is smaller than one 128-lane vector.
        return _sinsig_jnp(flat).reshape(orig_shape)

    bulk = flat[:n_bulk] if rem else flat
    rows = n_bulk // _LANES
    x2d = bulk.reshape(rows, _LANES)

    tile_r = _choose_tile_rows(rows, itemsize)
    grid = (pl.cdiv(rows, tile_r),)

    out2d = pl.pallas_call(
        _sinsig_kernel,
        out_shape=jax.ShapeDtypeStruct((rows, _LANES), orig_dtype),
        grid_spec=pltpu.PrefetchScalarGridSpec(
            num_scalar_prefetch=0,
            grid=grid,
            in_specs=[pl.BlockSpec((tile_r, _LANES), lambda i: (i, 0))],
            out_specs=pl.BlockSpec((tile_r, _LANES), lambda i: (i, 0)),
        ),
        compiler_params=pltpu.CompilerParams(
            dimension_semantics=("parallel",),
            vmem_limit_bytes=_VMEM_LIMIT_BYTES,
        ),
        cost_estimate=pl.CostEstimate(
            flops=12 * n_bulk,
            transcendentals=n_bulk,
            bytes_accessed=2 * n_bulk * itemsize,
        ),
    )(x2d)

    out_flat = out2d.reshape(-1)
    if rem:
        out_flat = jnp.concatenate([out_flat, _sinsig_jnp(flat[n_bulk:])])
    return out_flat.reshape(orig_shape)


def sinsig_reference(x):
    xf = x.astype(jnp.float32)
    return (xf * jnp.sin((jnp.pi / 2.0) * jax.nn.sigmoid(xf))).astype(x.dtype)


if __name__ == "__main__":
    key = jax.random.PRNGKey(0)
    k1, k2, k3 = jax.random.split(key, 3)

    # 1) NCHW activation, lane-aligned case: 2*4*16*16 = 2048 = 16 * 128.
    x1 = jax.random.normal(k1, (2, 4, 16, 16), dtype=jnp.float32)
    out1 = jax.block_until_ready(sinsig(x1))
    ref1 = sinsig_reference(x1)
    assert out1.shape == x1.shape and out1.dtype == x1.dtype
    assert jnp.allclose(out1, ref1, atol=1e-5, rtol=1e-5), "mismatch (aligned f32)"

    # 2) Ragged case: 3*5*11 = 165 elements -> 128-element bulk (kernel) + 37 tail (jnp).
    x2 = jax.random.normal(k2, (3, 5, 11), dtype=jnp.float32)
    out2 = jax.block_until_ready(sinsig(x2))
    ref2 = sinsig_reference(x2)
    assert out2.shape == x2.shape and out2.dtype == x2.dtype
    assert jnp.allclose(out2, ref2, atol=1e-5, rtol=1e-5), "mismatch (ragged f32)"

    # 3) bf16, aligned: 4*8*32 = 1024 elements.
    x3 = jax.random.normal(k3, (4, 8, 32), dtype=jnp.bfloat16)
    out3 = jax.block_until_ready(sinsig(x3))
    ref3 = sinsig_reference(x3)
    assert out3.shape == x3.shape and out3.dtype == x3.dtype
    assert jnp.allclose(out3.astype(jnp.float32), ref3.astype(jnp.float32),
                        atol=1e-2, rtol=1e-2), "mismatch (bf16)"

    print("KERNEL_OK")
</pallas_src>

<mosaic_0001>
module attributes {stable_mosaic.version = 11 : i64} {
  func.func @_sinsig_kernel(%arg0: i32, %arg1: memref<16x128xf32, #tpu.memory_space<vmem>>, %arg2: memref<16x128xf32, #tpu.memory_space<vmem>>) attributes {dimension_semantics = [#tpu.dimension_semantics<parallel>], iteration_bounds = array<i64: 1>, scalar_prefetch = 0 : i64, scratch_operands = 0 : i64, tpu.core_type = #tpu.core_type<tc>, window_params = [{transform_indices = @transform_0, window_bounds = array<i64: 16, 128>}, {transform_indices = @transform_1, window_bounds = array<i64: 16, 128>}]} {
    %c0 = arith.constant 0 : index
    %c0_0 = arith.constant 0 : index
    %0 = vector.load %arg1[%c0, %c0_0] : memref<16x128xf32, #tpu.memory_space<vmem>>, vector<16x128xf32>
    %cst = arith.constant 5.000000e-01 : f32
    %1 = vector.broadcast %cst : f32 to vector<16x128xf32>
    %2 = arith.mulf %1, %0 : vector<16x128xf32>
    %3 = math.tanh %2 : vector<16x128xf32>
    %cst_1 = arith.constant 0.785398185 : f32
    %4 = vector.broadcast %cst_1 : f32 to vector<16x128xf32>
    %5 = arith.mulf %4, %3 : vector<16x128xf32>
    %cst_2 = arith.constant 0.785398185 : f32
    %6 = vector.broadcast %cst_2 : f32 to vector<16x128xf32>
    %7 = arith.addf %5, %6 : vector<16x128xf32>
    %8 = arith.mulf %7, %7 : vector<16x128xf32>
    %cst_3 = arith.constant -2.50521079E-8 : f32
    %9 = vector.broadcast %cst_3 : f32 to vector<16x128xf32>
    %10 = arith.mulf %9, %8 : vector<16x128xf32>
    %cst_4 = arith.constant 2.75573188E-6 : f32
    %11 = vector.broadcast %cst_4 : f32 to vector<16x128xf32>
    %12 = arith.addf %10, %11 : vector<16x128xf32>
    %13 = arith.mulf %12, %8 : vector<16x128xf32>
    %cst_5 = arith.constant -1.98412701E-4 : f32
    %14 = vector.broadcast %cst_5 : f32 to vector<16x128xf32>
    %15 = arith.addf %13, %14 : vector<16x128xf32>
    %16 = arith.mulf %15, %8 : vector<16x128xf32>
    %cst_6 = arith.constant 0.00833333377 : f32
    %17 = vector.broadcast %cst_6 : f32 to vector<16x128xf32>
    %18 = arith.addf %16, %17 : vector<16x128xf32>
    %19 = arith.mulf %18, %8 : vector<16x128xf32>
    %cst_7 = arith.constant -0.166666672 : f32
    %20 = vector.broadcast %cst_7 : f32 to vector<16x128xf32>
    %21 = arith.addf %19, %20 : vector<16x128xf32>
    %22 = arith.mulf %21, %8 : vector<16x128xf32>
    %cst_8 = arith.constant 1.000000e+00 : f32
    %23 = vector.broadcast %cst_8 : f32 to vector<16x128xf32>
    %24 = arith.addf %22, %23 : vector<16x128xf32>
    %25 = arith.mulf %7, %24 : vector<16x128xf32>
    %26 = arith.mulf %0, %25 : vector<16x128xf32>
    %c0_9 = arith.constant 0 : index
    %c0_10 = arith.constant 0 : index
    %27 = vector.load %arg2[%c0_9, %c0_10] : memref<16x128xf32, #tpu.memory_space<vmem>>, vector<16x128xf32>
    tpu.vector_store %arg2[%c0_9, %c0_10], %26 {strides = array<i32>} : memref<16x128xf32, #tpu.memory_space<vmem>>, vector<16x128xf32>,
    return
  }
  func.func @transform_0(%arg0: i32) -> (i32, i32) {
    %c0_i32 = arith.constant 0 : i32
    %c0_i32_0 = arith.constant 0 : i32
    return %arg0, %c0_i32 : i32, i32
  }
  func.func @transform_1(%arg0: i32) -> (i32, i32) {
    %c0_i32 = arith.constant 0 : i32
    %c0_i32_0 = arith.constant 0 : i32
    return %arg0, %c0_i32 : i32, i32
  }
}

</mosaic_0001>

<bundles_post_ra>
// kernel: tpu_custom_call.1
= control target key start
LH: loop header
LB: loop body
LE: loop exit
PB: predicated region body
PF: predicated region fallthrough
CT: control target
= control target key end

     0   :  { %6 = vsyncpa [#allocation3], 0  ;;  %s178_s0 = inlined_call_operand.hbm [shape: f32[16,128], index: 0, kind: input, shape index: {}]   ;;  %s179_s1 = inlined_call_operand.hbm [shape: f32[16,128], index: 1, kind: output, shape index: {}]  }
   0x1   :  { %7 = vsyncpa [#allocation4], 0  ;;  %s134_s6 = smov [#allocation2]   ;;  %s86_s10 = scalar_lea.hbm %s178_s0, 256 }
   0x2   :  { %s13_s7 = sshll.u32 %s134_s6, 4  ;;  %p87_p0 = scmp.ne.s32.totalorder %s178_s0, %s86_s10  ;;  %s14_s7 = int_to_ptr.vmem [resolvable:$true] %s13_s7 }
   0x3   :  { %p90_p1 = scmp.lt.u32.totalorder %s86_s10, %s178_s0 }
   0x5   :  { %p92_p2 = pnand %p90_p1, %p87_p0 }
   0x7   :  { %95 = shalt.err (!%p92_p2)
}
   0x8   :  { %s96_s15 = scalar_lea.vmem %s14_s7, 256  ;;  %p101_p4 = scmp.lt.s32.totalorder %s14_s7, %s14_s7 }
   0x9   :  { %p97_p3 = scmp.ne.s32.totalorder %s14_s7, %s96_s15  ;;  %p102_p5 = scmp.lt.s32.totalorder %s96_s15, %s96_s15 }
   0xb   :  { %p103_p6 = por %p102_p5, %p101_p4 }
   0xd   :  { %p104_p7 = pnand %p103_p6, %p97_p3 }
   0xf   :  { %107 = shalt.err (!%p104_p7)
}
  0x10   :  { %s135_s16 = smov 128   ;;  %s136_s17 = smov 8  }
  0x11   :  { %19 = dma.hbm_to_vmem [thread:$0]  %s178_s0, 256, %s14_s7, [#allocation3], %s135_s16, %s135_s16, %s136_s17  }
  0x12   :  { %130 = dma.done.wait [#allocation3], 256  }
  0x13   :  { %131 = vsyncadd [#allocation3], 4294967040  ;;  %v23_v0 = vld [vmem:[#allocation2] sm:$0xff]  ;;  %v24_v1 = vld [vmem:[#allocation2 + $0x8] sm:$0xff]  ;;  %s137_s0 = smov [#allocation5]  }
  0x14   :  { %v25_v2 = vmul.f32 0.5, %v23_v0  ;;  %v26_v3 = vmul.f32 0.5, %v24_v1  ;;  %s66_s20 = sshll.u32 %s137_s0, 4  ;;  %s67_s20 = int_to_ptr.vmem [resolvable:$true] %s66_s20 }
  0x15   :  { %s108_s21 = scalar_lea.vmem %s67_s20, 256  ;;  %p113_p9 = scmp.lt.s32.totalorder %s67_s20, %s67_s20 }
  0x16   :  { %82 = vtanh.f32 %v25_v2  ;;  %p109_p8 = scmp.ne.s32.totalorder %s67_s20, %s108_s21  ;;  %p114_p10 = scmp.lt.s32.totalorder %s108_s21, %s108_s21 }
  0x17   :  { %84 = vtanh.f32 %v26_v3 }
  0x18   :  { %p115_p11 = por %p114_p10, %p113_p9 }
  0x1a   :  { %p116_p12 = pnand %p115_p11, %p109_p8 }
  0x20   :  { %v83_v4 = vpop.eup %82 }
  0x21   :  { %v85_v5 = vpop.eup %84  ;;  %v29_v6 = vmul.f32 0.7853982, %v83_v4 }
  0x22   :  { %v30_v7 = vmul.f32 0.7853982, %v85_v5 }
  0x23   :  { %v31_v8 = vadd.f32 0.7853982, %v29_v6 }
  0x24   :  { %v32_v9 = vadd.f32 0.7853982, %v30_v7 }
  0x25   :  { %v33_v10 = vmul.f32 %v31_v8, %v31_v8 }
  0x26   :  { %v34_v11 = vmul.f32 %v32_v9, %v32_v9 }
  0x27   :  { %v35_v12 = vmul.f32 -2.5052108e-08, %v33_v10 }
  0x28   :  { %v36_v13 = vmul.f32 -2.5052108e-08, %v34_v11 }
  0x29   :  { %v37_v14 = vadd.f32 2.7557319e-06, %v35_v12 }
  0x2a   :  { %v38_v15 = vadd.f32 2.7557319e-06, %v36_v13 }
  0x2b   :  { %v39_v16 = vmul.f32 %v37_v14, %v33_v10 }
  0x2c   :  { %v40_v17 = vmul.f32 %v38_v15, %v34_v11 }
  0x2d   :  { %v41_v18 = vadd.f32 -0.0001984127, %v39_v16 }
  0x2e   :  { %v42_v19 = vadd.f32 -0.0001984127, %v40_v17 }
  0x2f   :  { %v43_v20 = vmul.f32 %v41_v18, %v33_v10 }
  0x30   :  { %v44_v21 = vmul.f32 %v42_v19, %v34_v11 }
  0x31   :  { %v45_v22 = vadd.f32 0.008333334, %v43_v20 }
  0x32   :  { %v46_v23 = vadd.f32 0.008333334, %v44_v21 }
  0x33   :  { %v47_v24 = vmul.f32 %v45_v22, %v33_v10 }
  0x34   :  { %v48_v25 = vmul.f32 %v46_v23, %v34_v11 }
  0x35   :  { %v49_v26 = vadd.f32 -0.16666667, %v47_v24 }
  0x36   :  { %v50_v27 = vadd.f32 -0.16666667, %v48_v25 }
  0x37   :  { %v51_v28 = vmul.f32 %v49_v26, %v33_v10 }
  0x38   :  { %v52_v29 = vmul.f32 %v50_v27, %v34_v11 }
  0x39   :  { %v53_v30 = vadd.f32 1.0, %v51_v28 }
  0x3a   :  { %v54_v31 = vadd.f32 1.0, %v52_v29 }
  0x3b   :  { %v55_v32 = vmul.f32 %v53_v30, %v31_v8 }
  0x3c   :  { %v56_v33 = vmul.f32 %v54_v31, %v32_v9 }
  0x3d   :  { %v57_v34 = vmul.f32 %v55_v32, %v23_v0 }
  0x3e   :  { %v58_v35 = vmul.f32 %v56_v33, %v24_v1 }
  0x3f   :  { %59 = vst [vmem:[#allocation5] sm:$0xff] %v57_v34 }
  0x40   :  { %60 = vst [vmem:[#allocation5 + $0x8] sm:$0xff] %v58_v35 }
  0x41   :  { %119 = shalt.err (!%p116_p12)
}
  0x42   :  { %s120_s24 = scalar_lea.hbm %s179_s1, 256 }
  0x43   :  { %p121_p13 = scmp.ne.s32.totalorder %s179_s1, %s120_s24  ;;  %p124_p0 = scmp.lt.u32.totalorder %s120_s24, %s179_s1 }
  0x45   :  { %p126_p1 = pnand %p124_p0, %p121_p13 }
  0x47   :  { %129 = shalt.err (!%p126_p1)
}
  0x48   :  { %72 = dma.vmem_to_hbm [thread:$0]  %s67_s20, 256, %s179_s1, [#allocation4], %s135_s16, %s135_s16, %s136_s17  }
  0x49   :  { %132 = dma.done.wait [#allocation4], 256  }
  0x4a   :  { %133 = vsyncadd [#allocation4], 4294967040 }
  0x4b   :  { %76 = vsyncpa [#allocation3], 1 }
  0x4c   :  { %77 = vsyncpa [#allocation4], 1 }

</bundles_post_ra>
